<compile_context>
chip_gen: v5e
topology: v5e:2x2
jax: 0.10.0
libtpu: 0.0.40
codegen_flags: <defaults>
</compile_context>

<pallas_src>
import jax
import jax.numpy as jnp
from jax.experimental import pallas as pl
from jax.experimental.pallas import tpu as pltpu


def _make_kernel(num_objects: int, emb: int):
    def kernel(x_ref, y_ref, w_ref, o_ref):
        # x_ref, y_ref, o_ref: [block_rows, lanes] (batch packed 2-D).
        # w_ref: (emb,) f32 in SMEM -- pre-sigmoided weight table.
        idx = num_objects * x_ref[...] + y_ref[...]          # [R, L] int32
        # Gather-by-select: emb dense VPU selects on fully packed vregs,
        # each fill value is a cheap scalar broadcast from SMEM.
        # TODO(synk): for emb >~ 128 switch to a VMEM lane gather (jnp.take
        # on a resident (1, emb) row) to keep per-element work O(1).
        acc = jnp.zeros(idx.shape, jnp.float32)
        for e in range(emb):
            acc = jnp.where(idx == e, w_ref[e], acc)
        o_ref[...] = acc

    return kernel


def baseline_relational_independent(x, y, w, num_objects, *,
                                    max_lanes=512, max_block_rows=256):
    """x, y: integer object indices in [0, num_objects), shape [B] or [B, 1].
       w: Linear weight (PyTorch layout), shape [1, num_objects**2], float32.
       Returns sigmoid(w[0, num_objects*x + y]) with shape [B, 1]."""
    emb = num_objects * num_objects

    x = jnp.asarray(x).reshape(-1).astype(jnp.int32)
    y = jnp.asarray(y).reshape(-1).astype(jnp.int32)
    b = x.shape[0]

    # Pre-apply sigmoid to the tiny (emb,) table: exact for a one-hot gather,
    # and removes all EUP work from the (memory-bound) kernel.
    table = jax.nn.sigmoid(jnp.asarray(w, jnp.float32).reshape(emb))

    # 2-D batch layout: [rows, lanes], lanes a multiple of 128.
    lanes = min(max_lanes, ((b + 127) // 128) * 128)
    rows = pl.cdiv(b, lanes)
    b_pad = rows * lanes
    pad = b_pad - b
    if pad:  # only the last partial lane-row is padded (index 0 is valid)
        x = jnp.pad(x, (0, pad))
        y = jnp.pad(y, (0, pad))
    x2 = x.reshape(rows, lanes)
    y2 = y.reshape(rows, lanes)

    # Row-block size: as large as reasonable to amortise per-step overhead,
    # but aim for >=2 grid steps so v7x can shard across its 2 TensorCores.
    if rows <= 8:
        block_rows = rows                      # single small block (== full dim)
    else:
        block_rows = min(max_block_rows, ((pl.cdiv(rows, 2) + 7) // 8) * 8)
    grid = (pl.cdiv(rows, block_rows),)

    batch_map = lambda i: (i, 0)

    out = pl.pallas_call(
        _make_kernel(num_objects, emb),
        out_shape=jax.ShapeDtypeStruct((rows, lanes), jnp.float32),
        grid_spec=pltpu.PrefetchScalarGridSpec(
            num_scalar_prefetch=0,
            grid=grid,
            in_specs=[
                pl.BlockSpec((block_rows, lanes), batch_map),      # x
                pl.BlockSpec((block_rows, lanes), batch_map),      # y
                pl.BlockSpec(memory_space=pltpu.MemorySpace.SMEM),  # table
            ],
            out_specs=pl.BlockSpec((block_rows, lanes), batch_map),
        ),
        compiler_params=pltpu.CompilerParams(
            dimension_semantics=("parallel",)),
    )(x2, y2, table)

    return out.reshape(-1)[:b].reshape(b, 1)


def _reference(x, y, w, num_objects):
    """Pure-JAX reference matching the PyTorch module."""
    x = jnp.asarray(x).reshape(-1)
    y = jnp.asarray(y).reshape(-1)
    emb = num_objects * num_objects
    flat = num_objects * x + y
    onehot = jax.nn.one_hot(flat, emb, dtype=jnp.float32)
    logit = onehot @ jnp.asarray(w, jnp.float32).T        # [B, 1]
    return jax.nn.sigmoid(logit)


if __name__ == "__main__":
    key = jax.random.PRNGKey(0)
    k_x, k_y, k_w = jax.random.split(key, 3)

    num_objects = 4
    batch = 16
    emb = num_objects * num_objects

    x = jax.random.randint(k_x, (batch, 1), 0, num_objects, jnp.int32)
    y = jax.random.randint(k_y, (batch, 1), 0, num_objects, jnp.int32)
    # PyTorch nn.Linear(E, 1, bias=False) init: U(-1/sqrt(E), 1/sqrt(E)).
    lim = 1.0 / (emb ** 0.5)
    w = jax.random.uniform(k_w, (1, emb), jnp.float32, -lim, lim)

    out = baseline_relational_independent(x, y, w, num_objects)
    out = jax.block_until_ready(out)

    ref = _reference(x, y, w, num_objects)
    assert out.shape == (batch, 1)
    assert jnp.allclose(out, ref, atol=1e-6, rtol=1e-6), "mismatch vs JAX reference"

    print("KERNEL_OK")
</pallas_src>

<mosaic_0001>
module attributes {stable_mosaic.version = 11 : i64} {
  func.func @kernel(%arg0: i32, %arg1: memref<1x128xi32, #tpu.memory_space<vmem>>, %arg2: memref<1x128xi32, #tpu.memory_space<vmem>>, %arg3: memref<16xf32, #tpu.memory_space<smem>>, %arg4: memref<1x128xf32, #tpu.memory_space<vmem>>) attributes {dimension_semantics = [#tpu.dimension_semantics<parallel>], iteration_bounds = array<i64: 1>, scalar_prefetch = 0 : i64, scratch_operands = 0 : i64, tpu.core_type = #tpu.core_type<tc>, window_params = [{transform_indices = @transform_0, window_bounds = array<i64: 1, 128>}, {transform_indices = @transform_1, window_bounds = array<i64: 1, 128>}, {transform_indices = @transform_2, window_bounds = array<i64: 16>}, {transform_indices = @transform_3, window_bounds = array<i64: 1, 128>}]} {
    %c0 = arith.constant 0 : index
    %c0_0 = arith.constant 0 : index
    %0 = vector.load %arg1[%c0, %c0_0] : memref<1x128xi32, #tpu.memory_space<vmem>>, vector<1x128xi32>
    %c4_i32 = arith.constant 4 : i32
    %1 = vector.broadcast %c4_i32 : i32 to vector<1x128xi32>
    %2 = arith.muli %1, %0 : vector<1x128xi32>
    %c0_1 = arith.constant 0 : index
    %c0_2 = arith.constant 0 : index
    %3 = vector.load %arg2[%c0_1, %c0_2] : memref<1x128xi32, #tpu.memory_space<vmem>>, vector<1x128xi32>
    %4 = arith.addi %2, %3 : vector<1x128xi32>
    %cst = arith.constant 0.000000e+00 : f32
    %5 = vector.broadcast %cst : f32 to vector<1x128xf32>
    %c0_i32 = arith.constant 0 : i32
    %6 = vector.broadcast %c0_i32 : i32 to vector<1x128xi32>
    %7 = arith.cmpi eq, %4, %6 : vector<1x128xi32>
    %c0_3 = arith.constant 0 : index
    %8 = memref.load %arg3[%c0_3] : memref<16xf32, #tpu.memory_space<smem>>
    %9 = vector.broadcast %8 : f32 to vector<1x128xf32>
    %10 = arith.select %7, %9, %5 : vector<1x128xi1>, vector<1x128xf32>
    %c1_i32 = arith.constant 1 : i32
    %11 = vector.broadcast %c1_i32 : i32 to vector<1x128xi32>
    %12 = arith.cmpi eq, %4, %11 : vector<1x128xi32>
    %c1 = arith.constant 1 : index
    %13 = memref.load %arg3[%c1] : memref<16xf32, #tpu.memory_space<smem>>
    %14 = vector.broadcast %13 : f32 to vector<1x128xf32>
    %15 = arith.select %12, %14, %10 : vector<1x128xi1>, vector<1x128xf32>
    %c2_i32 = arith.constant 2 : i32
    %16 = vector.broadcast %c2_i32 : i32 to vector<1x128xi32>
    %17 = arith.cmpi eq, %4, %16 : vector<1x128xi32>
    %c2 = arith.constant 2 : index
    %18 = memref.load %arg3[%c2] : memref<16xf32, #tpu.memory_space<smem>>
    %19 = vector.broadcast %18 : f32 to vector<1x128xf32>
    %20 = arith.select %17, %19, %15 : vector<1x128xi1>, vector<1x128xf32>
    %c3_i32 = arith.constant 3 : i32
    %21 = vector.broadcast %c3_i32 : i32 to vector<1x128xi32>
    %22 = arith.cmpi eq, %4, %21 : vector<1x128xi32>
    %c3 = arith.constant 3 : index
    %23 = memref.load %arg3[%c3] : memref<16xf32, #tpu.memory_space<smem>>
    %24 = vector.broadcast %23 : f32 to vector<1x128xf32>
    %25 = arith.select %22, %24, %20 : vector<1x128xi1>, vector<1x128xf32>
    %c4_i32_4 = arith.constant 4 : i32
    %26 = vector.broadcast %c4_i32_4 : i32 to vector<1x128xi32>
    %27 = arith.cmpi eq, %4, %26 : vector<1x128xi32>
    %c4 = arith.constant 4 : index
    %28 = memref.load %arg3[%c4] : memref<16xf32, #tpu.memory_space<smem>>
    %29 = vector.broadcast %28 : f32 to vector<1x128xf32>
    %30 = arith.select %27, %29, %25 : vector<1x128xi1>, vector<1x128xf32>
    %c5_i32 = arith.constant 5 : i32
    %31 = vector.broadcast %c5_i32 : i32 to vector<1x128xi32>
    %32 = arith.cmpi eq, %4, %31 : vector<1x128xi32>
    %c5 = arith.constant 5 : index
    %33 = memref.load %arg3[%c5] : memref<16xf32, #tpu.memory_space<smem>>
    %34 = vector.broadcast %33 : f32 to vector<1x128xf32>
    %35 = arith.select %32, %34, %30 : vector<1x128xi1>, vector<1x128xf32>
    %c6_i32 = arith.constant 6 : i32
    %36 = vector.broadcast %c6_i32 : i32 to vector<1x128xi32>
    %37 = arith.cmpi eq, %4, %36 : vector<1x128xi32>
    %c6 = arith.constant 6 : index
    %38 = memref.load %arg3[%c6] : memref<16xf32, #tpu.memory_space<smem>>
    %39 = vector.broadcast %38 : f32 to vector<1x128xf32>
    %40 = arith.select %37, %39, %35 : vector<1x128xi1>, vector<1x128xf32>
    %c7_i32 = arith.constant 7 : i32
    %41 = vector.broadcast %c7_i32 : i32 to vector<1x128xi32>
    %42 = arith.cmpi eq, %4, %41 : vector<1x128xi32>
    %c7 = arith.constant 7 : index
    %43 = memref.load %arg3[%c7] : memref<16xf32, #tpu.memory_space<smem>>
    %44 = vector.broadcast %43 : f32 to vector<1x128xf32>
    %45 = arith.select %42, %44, %40 : vector<1x128xi1>, vector<1x128xf32>
    %c8_i32 = arith.constant 8 : i32
    %46 = vector.broadcast %c8_i32 : i32 to vector<1x128xi32>
    %47 = arith.cmpi eq, %4, %46 : vector<1x128xi32>
    %c8 = arith.constant 8 : index
    %48 = memref.load %arg3[%c8] : memref<16xf32, #tpu.memory_space<smem>>
    %49 = vector.broadcast %48 : f32 to vector<1x128xf32>
    %50 = arith.select %47, %49, %45 : vector<1x128xi1>, vector<1x128xf32>
    %c9_i32 = arith.constant 9 : i32
    %51 = vector.broadcast %c9_i32 : i32 to vector<1x128xi32>
    %52 = arith.cmpi eq, %4, %51 : vector<1x128xi32>
    %c9 = arith.constant 9 : index
    %53 = memref.load %arg3[%c9] : memref<16xf32, #tpu.memory_space<smem>>
    %54 = vector.broadcast %53 : f32 to vector<1x128xf32>
    %55 = arith.select %52, %54, %50 : vector<1x128xi1>, vector<1x128xf32>
    %c10_i32 = arith.constant 10 : i32
    %56 = vector.broadcast %c10_i32 : i32 to vector<1x128xi32>
    %57 = arith.cmpi eq, %4, %56 : vector<1x128xi32>
    %c10 = arith.constant 10 : index
    %58 = memref.load %arg3[%c10] : memref<16xf32, #tpu.memory_space<smem>>
    %59 = vector.broadcast %58 : f32 to vector<1x128xf32>
    %60 = arith.select %57, %59, %55 : vector<1x128xi1>, vector<1x128xf32>
    %c11_i32 = arith.constant 11 : i32
    %61 = vector.broadcast %c11_i32 : i32 to vector<1x128xi32>
    %62 = arith.cmpi eq, %4, %61 : vector<1x128xi32>
    %c11 = arith.constant 11 : index
    %63 = memref.load %arg3[%c11] : memref<16xf32, #tpu.memory_space<smem>>
    %64 = vector.broadcast %63 : f32 to vector<1x128xf32>
    %65 = arith.select %62, %64, %60 : vector<1x128xi1>, vector<1x128xf32>
    %c12_i32 = arith.constant 12 : i32
    %66 = vector.broadcast %c12_i32 : i32 to vector<1x128xi32>
    %67 = arith.cmpi eq, %4, %66 : vector<1x128xi32>
    %c12 = arith.constant 12 : index
    %68 = memref.load %arg3[%c12] : memref<16xf32, #tpu.memory_space<smem>>
    %69 = vector.broadcast %68 : f32 to vector<1x128xf32>
    %70 = arith.select %67, %69, %65 : vector<1x128xi1>, vector<1x128xf32>
    %c13_i32 = arith.constant 13 : i32
    %71 = vector.broadcast %c13_i32 : i32 to vector<1x128xi32>
    %72 = arith.cmpi eq, %4, %71 : vector<1x128xi32>
    %c13 = arith.constant 13 : index
    %73 = memref.load %arg3[%c13] : memref<16xf32, #tpu.memory_space<smem>>
    %74 = vector.broadcast %73 : f32 to vector<1x128xf32>
    %75 = arith.select %72, %74, %70 : vector<1x128xi1>, vector<1x128xf32>
    %c14_i32 = arith.constant 14 : i32
    %76 = vector.broadcast %c14_i32 : i32 to vector<1x128xi32>
    %77 = arith.cmpi eq, %4, %76 : vector<1x128xi32>
    %c14 = arith.constant 14 : index
    %78 = memref.load %arg3[%c14] : memref<16xf32, #tpu.memory_space<smem>>
    %79 = vector.broadcast %78 : f32 to vector<1x128xf32>
    %80 = arith.select %77, %79, %75 : vector<1x128xi1>, vector<1x128xf32>
    %c15_i32 = arith.constant 15 : i32
    %81 = vector.broadcast %c15_i32 : i32 to vector<1x128xi32>
    %82 = arith.cmpi eq, %4, %81 : vector<1x128xi32>
    %c15 = arith.constant 15 : index
    %83 = memref.load %arg3[%c15] : memref<16xf32, #tpu.memory_space<smem>>
    %84 = vector.broadcast %83 : f32 to vector<1x128xf32>
    %85 = arith.select %82, %84, %80 : vector<1x128xi1>, vector<1x128xf32>
    %c0_5 = arith.constant 0 : index
    %c0_6 = arith.constant 0 : index
    %86 = vector.load %arg4[%c0_5, %c0_6] : memref<1x128xf32, #tpu.memory_space<vmem>>, vector<1x128xf32>
    tpu.vector_store %arg4[%c0_5, %c0_6], %85 {strides = array<i32>} : memref<1x128xf32, #tpu.memory_space<vmem>>, vector<1x128xf32>,
    return
  }
  func.func @transform_0(%arg0: i32) -> (i32, i32) {
    %c0_i32 = arith.constant 0 : i32
    %c0_i32_0 = arith.constant 0 : i32
    return %arg0, %c0_i32 : i32, i32
  }
  func.func @transform_1(%arg0: i32) -> (i32, i32) {
    %c0_i32 = arith.constant 0 : i32
    %c0_i32_0 = arith.constant 0 : i32
    return %arg0, %c0_i32 : i32, i32
  }
  func.func @transform_2(%arg0: i32) -> i32 {
    %c0_i32 = arith.constant 0 : i32
    %c0_i32_0 = arith.constant 0 : i32
    return %c0_i32 : i32
  }
  func.func @transform_3(%arg0: i32) -> (i32, i32) {
    %c0_i32 = arith.constant 0 : i32
    %c0_i32_0 = arith.constant 0 : i32
    return %arg0, %c0_i32 : i32, i32
  }
}

</mosaic_0001>

<bundles_post_ra>
// kernel: tpu_custom_call.1
= control target key start
LH: loop header
LB: loop body
LE: loop exit
PB: predicated region body
PF: predicated region fallthrough
CT: control target
= control target key end

     0   :  { %8 = vsyncpa [#allocation3], 0  ;;  %s309_s0 = inlined_call_operand.hbm [shape: s32[1,128], index: 0, kind: input, shape index: {}]   ;;  %s310_s1 = inlined_call_operand.hbm [shape: s32[1,128], index: 1, kind: input, shape index: {}]   ;;  %s311_s2 = inlined_call_operand.vmem [shape: f32[16], index: 2, kind: input, shape index: {}]   ;;  %s312_s3 = inlined_call_operand.hbm [shape: f32[1,128], index: 3, kind: output, shape index: {}]  }
   0x1   :  { %9 = vsyncpa [#allocation7], 0 }
   0x2   :  { %10 = vsyncpa [#allocation5], 0 }
   0x3   :  { %11 = vsyncpa [#allocation4], 0  ;;  %s17_s14 = sshll.u32 %s309_s0, 4  ;;  %s255_s15 = smov [#allocation2]   ;;  %s18_s14 = int_to_ptr.hbm [resolvable:$true] %s17_s14 }
   0x4   :  { %s19_s16 = sshll.u32 %s255_s15, 4  ;;  %s28_s19 = sshll.u32 %s310_s1, 4  ;;  %s20_s16 = int_to_ptr.vmem [resolvable:$true] %s19_s16  ;;  %s29_s19 = int_to_ptr.hbm [resolvable:$true] %s28_s19 }
   0x5   :  { %22 = dma.hbm_to_vmem [thread:$0]  %s18_s14, 16, %s20_s16, [#allocation3]  }
   0x6   :  { %s256_s20 = smov [#allocation6]   ;;  %s39_s24 = sshll.u32 %s311_s2, 4  ;;  %s40_s24 = int_to_ptr.vmem [resolvable:$true] %s39_s24 }
   0x7   :  { %s30_s21 = sshll.u32 %s256_s20, 4  ;;  %s257_s0 = smov [#allocation8]   ;;  %s31_s21 = int_to_ptr.vmem [resolvable:$true] %s30_s21 }
   0x8   :  { %33 = dma.hbm_to_vmem [thread:$0]  %s29_s19, 16, %s31_s21, [#allocation7]  }
   0x9   :  { %42 = dma.vmem_to_smem %s40_s24, 16, %s257_s0, [#allocation5]  }
   0xa   :  { %247 = dma.done.wait [#allocation3], 16  }
   0xb   :  { %248 = vsyncadd [#allocation3], 4294967280 }
   0xc   :  { %249 = dma.done.wait [#allocation7], 16  }
   0xd   :  { %250 = vsyncadd [#allocation7], 4294967280 }
   0xe   :  { %251 = dma.done.wait [#allocation5], 16  }
   0xf   :  { %252 = vsyncadd [#allocation5], 4294967280 }
  0x10   :  { %55 = sfence }
  0x11   :  { %v56_v0 = vld [vmem:[#allocation2] sm:$0x1]  ;;  %v58_v1 = vld [vmem:[#allocation6] sm:$0x1]  ;;  %s61_s1 = sld [smem:[#allocation8]]  ;;  %s258_s12 = smov [#allocation9]  }
  0x12   :  { %v57_v2 = vmul.u32 4, %v56_v0  ;;  %s144_s25 = sld [smem:[#allocation8 + $0x1]]  ;;  %s130_s13 = sshll.u32 %s258_s12, 4  ;;  %s131_s13 = int_to_ptr.vmem [resolvable:$true] %s130_s13 }
  0x13   :  { %s145_s26 = sld [smem:[#allocation8 + $0x2]]  ;;  %s132_s16 = sshll.u32 %s312_s3, 4  ;;  %s133_s16 = int_to_ptr.hbm [resolvable:$true] %s132_s16 }
  0x14   :  { %v288_v3 = vadd.s32 %v58_v1, %v57_v2  ;;  %s146_s2 = sld [smem:[#allocation8 + $0x3]] }
  0x15   :  { %s147_s27 = sld [smem:[#allocation8 + $0x4]] }
  0x16   :  { %vm60_vm0 = vcmp.eq.s32.totalorder %v288_v3, 0  ;;  %vm64_vm1 = vcmp.eq.s32.totalorder %v288_v3, 1  ;;  %s148_s28 = sld [smem:[#allocation8 + $0x5]]  ;;  %vm68_vm2 = vcmp.eq.s32.totalorder %v288_v3, 2  ;;  %vm72_vm3 = vcmp.eq.s32.totalorder %v288_v3, 3 }
  0x17   :  { %v62_v4 = vstv %s61_s1  ;;  %s149_s29 = sld [smem:[#allocation8 + $0x6]]  ;;  %vm76_vm4 = vcmp.eq.s32.totalorder %v288_v3, 4  ;;  %vm80_vm5 = vcmp.eq.s32.totalorder %v288_v3, 5  ;;  %vm84_vm6 = vcmp.eq.s32.totalorder %v288_v3, 6 }
  0x18   :  { %v63_v5 = vsel %vm60_vm0, %v62_v4, 0.0  ;;  %v66_v6 = vstv %s144_s25  ;;  %s150_s30 = sld [smem:[#allocation8 + $0x7]]  ;;  %vm88_vm7 = vcmp.eq.s32.totalorder %v288_v3, 7  ;;  %vm92_vm8 = vcmp.eq.s32.totalorder %v288_v3, 8 }
  0x19   :  { %v67_v7 = vsel %vm64_vm1, %v66_v6, %v63_v5  ;;  %v70_v8 = vstv %s145_s26  ;;  %s151_s4 = sld [smem:[#allocation8 + $0x8]]  ;;  %vm96_vm9 = vcmp.eq.s32.totalorder %v288_v3, 9  ;;  %vm100_vm10 = vcmp.eq.s32.totalorder %v288_v3, 10 }
  0x1a   :  { %v71_v9 = vsel %vm68_vm2, %v70_v8, %v67_v7  ;;  %v74_v10 = vstv %s146_s2  ;;  %s152_s5 = sld [smem:[#allocation8 + $0x9]]  ;;  %vm104_vm11 = vcmp.eq.s32.totalorder %v288_v3, 11  ;;  %vm108_vm12 = vcmp.eq.s32.totalorder %v288_v3, 12 }
  0x1b   :  { %v75_v11 = vsel %vm72_vm3, %v74_v10, %v71_v9  ;;  %v78_v12 = vstv %s147_s27  ;;  %s153_s6 = sld [smem:[#allocation8 + $0xa]]  ;;  %vm112_vm13 = vcmp.eq.s32.totalorder %v288_v3, 13  ;;  %vm116_vm14 = vcmp.eq.s32.totalorder %v288_v3, 14 }
  0x1c   :  { %v79_v13 = vsel %vm76_vm4, %v78_v12, %v75_v11  ;;  %v82_v14 = vstv %s148_s28  ;;  %s154_s7 = sld [smem:[#allocation8 + $0xb]]  ;;  %vm120_vm15 = vcmp.eq.s32.totalorder %v288_v3, 15 }
  0x1d   :  { %v83_v15 = vsel %vm80_vm5, %v82_v14, %v79_v13  ;;  %v86_v16 = vstv %s149_s29  ;;  %s155_s8 = sld [smem:[#allocation8 + $0xc]] }
  0x1e   :  { %v87_v17 = vsel %vm84_vm6, %v86_v16, %v83_v15  ;;  %v90_v18 = vstv %s150_s30  ;;  %s156_s9 = sld [smem:[#allocation8 + $0xd]] }
  0x1f   :  { %v91_v19 = vsel %vm88_vm7, %v90_v18, %v87_v17  ;;  %v94_v20 = vstv %s151_s4  ;;  %s157_s10 = sld [smem:[#allocation8 + $0xe]] }
  0x20   :  { %v95_v21 = vsel %vm92_vm8, %v94_v20, %v91_v19  ;;  %v98_v22 = vstv %s152_s5  ;;  %s158_s11 = sld [smem:[#allocation8 + $0xf]] }
  0x21   :  { %v99_v23 = vsel %vm96_vm9, %v98_v22, %v95_v21  ;;  %v102_v24 = vstv %s153_s6 }
  0x22   :  { %v103_v25 = vsel %vm100_vm10, %v102_v24, %v99_v23  ;;  %v106_v26 = vstv %s154_s7 }
  0x23   :  { %v107_v27 = vsel %vm104_vm11, %v106_v26, %v103_v25  ;;  %v110_v28 = vstv %s155_s8 }
  0x24   :  { %v111_v29 = vsel %vm108_vm12, %v110_v28, %v107_v27  ;;  %v114_v30 = vstv %s156_s9 }
  0x25   :  { %v115_v31 = vsel %vm112_vm13, %v114_v30, %v111_v29  ;;  %v118_v32 = vstv %s157_s10 }
  0x26   :  { %v119_v33 = vsel %vm116_vm14, %v118_v32, %v115_v31  ;;  %v122_v34 = vstv %s158_s11 }
  0x27   :  { %v123_v35 = vsel %vm120_vm15, %v122_v34, %v119_v33 }
  0x28   :  { %124 = vst [vmem:[#allocation9] sm:$0x1] %v123_v35 }
  0x29   :  { %135 = dma.vmem_to_hbm [thread:$0]  %s131_s13, 16, %s133_s16, [#allocation4]  }
  0x2a   :  { %253 = dma.done.wait [#allocation4], 16  }
  0x2b   :  { %254 = vsyncadd [#allocation4], 4294967280 }
  0x2c   :  { %140 = vsyncpa [#allocation3], 1 }
  0x2d   :  { %141 = vsyncpa [#allocation7], 1 }
  0x2e   :  { %142 = vsyncpa [#allocation4], 1 }
  0x2f   :  { %143 = vsyncpa [#allocation5], 1 }

</bundles_post_ra>
